<compile_context>
chip_gen: v5e
topology: v5e:2x2
jax: 0.10.0
libtpu: 0.0.40
codegen_flags: <defaults>
</compile_context>

<pallas_src>
import functools

import jax
import jax.numpy as jnp
from jax.experimental import pallas as pl
from jax.experimental.pallas import tpu as pltpu

KSIZE = 3          # kernel_size
NEG_SLOPE = 0.01   # nn.LeakyReLU default
BN_EPS = 1e-5


def _conv_stack_kernel(H, W, C0, C1,
                       x_ref, t0_ref, b0_ref, s0_ref, h0_ref,
                       t1_ref, b1_ref, s1_ref, h1_ref,
                       o_ref, xp0_ref, xp1_ref):
    """Two fused blocks: Conv2dSame(3x3,s=1) + LeakyReLU + BatchNorm(eval), twice.

    x_ref:    (N, H, W*C0)          input rows, channel-minor (lane axis = W*C0)
    tK_ref:   (3, Wp*Cin, W*Cout)   row-Toeplitz conv weights, one slab per dy tap
    bK/sK/hK: (1, W*Cout)           per-(w, channel) conv bias / BN scale / BN shift
    o_ref:    (N, H, W*C1)          lane-dense output slab
    xpK_ref:  (N, Hp, Wp*Cin)       VMEM scratch: zero-halo padded activations
    """
    N = x_ref.shape[0]
    Wp = W + 2

    def fused_block(xp_ref, t_ref, b_ref, s_ref, sh_ref, c_in):
        row_w = Wp * c_in
        acc = jnp.zeros((N * H, W * C1), jnp.float32)
        # 3 lane-dense row-slab matmuls (one per vertical tap) on the MXU.
        for dy in range(KSIZE):
            rows = xp_ref[:, dy:dy + H, :].reshape(N * H, row_w)
            acc = acc + jnp.dot(rows, t_ref[dy],
                                preferred_element_type=jnp.float32)
        acc = acc + b_ref[...]                              # conv bias
        act = jnp.where(acc >= 0.0, acc, NEG_SLOPE * acc)   # LeakyReLU
        return act * s_ref[...] + sh_ref[...]               # BatchNorm (eval) affine

    # ---- block 0: zero-halo "same" padding into VMEM scratch ----
    xp0_ref[...] = jnp.zeros_like(xp0_ref)
    xp0_ref[:, 1:H + 1, C0:(W + 1) * C0] = x_ref[...]
    y = fused_block(xp0_ref, t0_ref, b0_ref, s0_ref, h0_ref, C0)    # (N*H, W*C1)

    # ---- block 1: intermediate never leaves VMEM ----
    xp1_ref[...] = jnp.zeros_like(xp1_ref)
    xp1_ref[:, 1:H + 1, C1:(W + 1) * C1] = y.reshape(N, H, W * C1)
    y = fused_block(xp1_ref, t1_ref, b1_ref, s1_ref, h1_ref, C1)    # (N*H, W*C1)

    # Single lane-dense store (W*C1 = 128 lanes at the demo shape).
    o_ref[...] = y.reshape(N, H, W * C1).astype(o_ref.dtype)


def _build_row_toeplitz(k, W):
    """(3,3,Cin,Cout) conv weight -> (3, (W+2)*Cin, W*Cout) row-Toeplitz slabs.

    T[dy, wp*Cin+ci, w*Cout+co] = k[dy, wp-w, ci, co] if 0 <= wp-w < 3 else 0
    so that out[(n,h), (w,co)] = sum_dy  rows_dy[(n,h)] @ T[dy].
    """
    KH, KW, Cin, Cout = k.shape
    Wp = W + KW - 1
    wp = jnp.arange(Wp)[:, None]                 # (Wp, 1)
    w = jnp.arange(W)[None, :]                   # (1, W)
    dx = wp - w                                  # (Wp, W)
    valid = ((dx >= 0) & (dx < KW)).astype(k.dtype)
    dx_c = jnp.clip(dx, 0, KW - 1)
    t = k[:, dx_c, :, :]                         # (KH, Wp, W, Cin, Cout)
    t = t * valid[None, :, :, None, None]
    t = jnp.transpose(t, (0, 1, 3, 2, 4))        # (KH, Wp, Cin, W, Cout)
    return t.reshape(KH, Wp * Cin, W * Cout)


def _tile_per_channel(v, W):
    """(Cout,) -> (1, W*Cout) matching the (w, co) output-column order."""
    return jnp.tile(v.reshape(-1), W).reshape(1, -1)


@jax.jit
def conv_stack(x_nchw, params):
    """Conv_Stack(n_blocks=2) forward.  x_nchw: (N, C0, H, W) float32."""
    N, C0, H, W = x_nchw.shape
    (w0, b0, sc0, sf0), (w1, b1, sc1, sf1) = params
    C1 = w0.shape[-1]
    Hp, Wp = H + KSIZE - 1, W + KSIZE - 1

    # Weights / per-channel vectors pre-arranged in the kernel's lane-dense layout.
    t0 = _build_row_toeplitz(w0, W)              # (3, Wp*C0, W*C1)
    t1 = _build_row_toeplitz(w1, W)              # (3, Wp*C1, W*C1)
    b0t, s0t, f0t = (_tile_per_channel(v, W) for v in (b0, sc0, sf0))
    b1t, s1t, f1t = (_tile_per_channel(v, W) for v in (b1, sc1, sf1))

    # NCHW -> channel-minor rows (N, H, W*C0); lane axis = W*C0.
    x_rows = jnp.transpose(x_nchw, (0, 2, 3, 1)).reshape(N, H, W * C0)

    flops = 2 * (N * H) * KSIZE * Wp * (C0 + C1) * (W * C1)
    bytes_accessed = 4 * (x_rows.size + t0.size + t1.size
                          + 6 * W * C1 + N * H * W * C1)

    out_rows = pl.pallas_call(
        functools.partial(_conv_stack_kernel, H, W, C0, C1),
        out_shape=jax.ShapeDtypeStruct((N, H, W * C1), jnp.float32),
        grid_spec=pltpu.PrefetchScalarGridSpec(
            num_scalar_prefetch=0,
            grid=(1,),   # whole problem in one step; batch folded into matmul rows
            in_specs=[
                pl.BlockSpec((N, H, W * C0), lambda i: (0, 0, 0)),
                pl.BlockSpec((KSIZE, Wp * C0, W * C1), lambda i: (0, 0, 0)),
                pl.BlockSpec((1, W * C1), lambda i: (0, 0)),
                pl.BlockSpec((1, W * C1), lambda i: (0, 0)),
                pl.BlockSpec((1, W * C1), lambda i: (0, 0)),
                pl.BlockSpec((KSIZE, Wp * C1, W * C1), lambda i: (0, 0, 0)),
                pl.BlockSpec((1, W * C1), lambda i: (0, 0)),
                pl.BlockSpec((1, W * C1), lambda i: (0, 0)),
                pl.BlockSpec((1, W * C1), lambda i: (0, 0)),
            ],
            out_specs=pl.BlockSpec((N, H, W * C1), lambda i: (0, 0, 0)),
            scratch_shapes=[
                pltpu.VMEM((N, Hp, Wp * C0), jnp.float32),   # padded input
                pltpu.VMEM((N, Hp, Wp * C1), jnp.float32),   # padded intermediate
            ],
        ),
        compiler_params=pltpu.CompilerParams(
            dimension_semantics=("arbitrary",),
            vmem_limit_bytes=16 * 1024 * 1024),
        cost_estimate=pl.CostEstimate(
            flops=flops, transcendentals=0, bytes_accessed=bytes_accessed),
    )(x_rows, t0, b0t, s0t, f0t, t1, b1t, s1t, f1t)

    # (N, H, W*C1) -> NHWC (free reshape) -> NCHW.
    return jnp.transpose(out_rows.reshape(N, H, W, C1), (0, 3, 1, 2))


def make_block_params(key, cin, cout):
    """Deterministic synthetic parameters for one Convolution_Block (eval mode)."""
    k1, k2, k3, k4, k5, k6 = jax.random.split(key, 6)
    # NOTE: torch Conv2d weights are (Cout, Cin, kh, kw); checkpoints would need a
    # transpose to this (kh, kw, Cin, Cout) layout. Synthetic params already match.
    w = jax.random.normal(k1, (KSIZE, KSIZE, cin, cout), jnp.float32) * 0.1
    b = jax.random.normal(k2, (cout,), jnp.float32) * 0.05
    gamma = 1.0 + 0.1 * jax.random.normal(k3, (cout,), jnp.float32)
    beta = 0.1 * jax.random.normal(k4, (cout,), jnp.float32)
    run_mean = 0.05 * jax.random.normal(k5, (cout,), jnp.float32)
    run_var = 1.0 + 0.1 * jax.random.uniform(k6, (cout,), jnp.float32)
    scale = gamma / jnp.sqrt(run_var + BN_EPS)
    shift = beta - run_mean * scale
    return w, b, scale, shift


def _reference(x_nchw, params):
    """Pure-JAX reference for the eval-mode Conv_Stack forward."""
    x = x_nchw
    for (w, b, scale, shift) in params:
        y = jax.lax.conv_general_dilated(
            x, w, window_strides=(1, 1), padding="SAME",
            dimension_numbers=("NCHW", "HWIO", "NCHW"),
            precision=jax.lax.Precision.HIGHEST)
        y = y + b.reshape(1, -1, 1, 1)
        y = jnp.where(y >= 0, y, NEG_SLOPE * y)
        x = y * scale.reshape(1, -1, 1, 1) + shift.reshape(1, -1, 1, 1)
    return x


if __name__ == "__main__":
    key = jax.random.PRNGKey(0)
    k_x, k_b0, k_b1 = jax.random.split(key, 3)

    N, Cin, H, W = 2, 4, 16, 16
    Cout = 8
    x = jax.random.normal(k_x, (N, Cin, H, W), jnp.float32)

    # Conv_Stack(n_blocks=2, input_channels=4, output_channels=8)
    params = (
        make_block_params(k_b0, Cin, Cout),   # block 0: 4 -> 8
        make_block_params(k_b1, Cout, Cout),  # block 1: 8 -> 8
    )

    out = conv_stack(x, params)
    jax.block_until_ready(out)
    assert out.shape == (N, Cout, H, W), out.shape

    ref = _reference(x, params)
    err = float(jnp.max(jnp.abs(out - ref)))
    assert err < 1e-3, f"max abs err {err}"
    print("KERNEL_OK")
</pallas_src>

<mosaic_0001>
module attributes {stable_mosaic.version = 11 : i64} {
  func.func @_conv_stack_kernel(%arg0: i32, %arg1: memref<2x16x64xf32, #tpu.memory_space<vmem>>, %arg2: memref<3x72x128xf32, #tpu.memory_space<vmem>>, %arg3: memref<1x128xf32, #tpu.memory_space<vmem>>, %arg4: memref<1x128xf32, #tpu.memory_space<vmem>>, %arg5: memref<1x128xf32, #tpu.memory_space<vmem>>, %arg6: memref<3x144x128xf32, #tpu.memory_space<vmem>>, %arg7: memref<1x128xf32, #tpu.memory_space<vmem>>, %arg8: memref<1x128xf32, #tpu.memory_space<vmem>>, %arg9: memref<1x128xf32, #tpu.memory_space<vmem>>, %arg10: memref<2x16x128xf32, #tpu.memory_space<vmem>>, %arg11: memref<2x18x72xf32, #tpu.memory_space<vmem>>, %arg12: memref<2x18x144xf32, #tpu.memory_space<vmem>>) attributes {dimension_semantics = [#tpu.dimension_semantics<arbitrary>], iteration_bounds = array<i64: 1>, scalar_prefetch = 0 : i64, scratch_operands = 2 : i64, tpu.core_type = #tpu.core_type<tc>, window_params = [{pipeline_mode = #tpu.pipeline_mode<synchronous>, transform_indices = @transform_0, window_bounds = array<i64: 2, 16, 64>}, {pipeline_mode = #tpu.pipeline_mode<synchronous>, transform_indices = @transform_1, window_bounds = array<i64: 3, 72, 128>}, {pipeline_mode = #tpu.pipeline_mode<synchronous>, transform_indices = @transform_2, window_bounds = array<i64: 1, 128>}, {pipeline_mode = #tpu.pipeline_mode<synchronous>, transform_indices = @transform_3, window_bounds = array<i64: 1, 128>}, {pipeline_mode = #tpu.pipeline_mode<synchronous>, transform_indices = @transform_4, window_bounds = array<i64: 1, 128>}, {pipeline_mode = #tpu.pipeline_mode<synchronous>, transform_indices = @transform_5, window_bounds = array<i64: 3, 144, 128>}, {pipeline_mode = #tpu.pipeline_mode<synchronous>, transform_indices = @transform_6, window_bounds = array<i64: 1, 128>}, {pipeline_mode = #tpu.pipeline_mode<synchronous>, transform_indices = @transform_7, window_bounds = array<i64: 1, 128>}, {pipeline_mode = #tpu.pipeline_mode<synchronous>, transform_indices = @transform_8, window_bounds = array<i64: 1, 128>}, {pipeline_mode = #tpu.pipeline_mode<synchronous>, transform_indices = @transform_9, window_bounds = array<i64: 2, 16, 128>}]} {
    %cst = arith.constant 0.000000e+00 : f32
    %0 = vector.broadcast %cst : f32 to vector<2x18x72xf32>
    %c0 = arith.constant 0 : index
    %c0_0 = arith.constant 0 : index
    %c0_1 = arith.constant 0 : index
    %1 = vector.load %arg11[%c0, %c0_0, %c0_1] : memref<2x18x72xf32, #tpu.memory_space<vmem>>, vector<2x18x72xf32>
    tpu.vector_store %arg11[%c0, %c0_0, %c0_1], %0 {strides = array<i32>} : memref<2x18x72xf32, #tpu.memory_space<vmem>>, vector<2x18x72xf32>,
    %c0_2 = arith.constant 0 : index
    %c0_3 = arith.constant 0 : index
    %c0_4 = arith.constant 0 : index
    %2 = vector.load %arg1[%c0_2, %c0_3, %c0_4] : memref<2x16x64xf32, #tpu.memory_space<vmem>>, vector<2x16x64xf32>
    %c0_5 = arith.constant 0 : index
    %c1 = arith.constant 1 : index
    %c4 = arith.constant 4 : index
    %3 = vector.load %arg11[%c0_5, %c1, %c4] : memref<2x18x72xf32, #tpu.memory_space<vmem>>, vector<2x16x64xf32>
    tpu.vector_store %arg11[%c0_5, %c1, %c4], %2 {strides = array<i32>} : memref<2x18x72xf32, #tpu.memory_space<vmem>>, vector<2x16x64xf32>,
    %cst_6 = arith.constant 0.000000e+00 : f32
    %4 = vector.broadcast %cst_6 : f32 to vector<32x128xf32>
    %c0_7 = arith.constant 0 : index
    %c0_8 = arith.constant 0 : index
    %c0_9 = arith.constant 0 : index
    %5 = vector.load %arg11[%c0_7, %c0_8, %c0_9] : memref<2x18x72xf32, #tpu.memory_space<vmem>>, vector<2x16x72xf32>
    %6 = vector.shape_cast %5 : vector<2x16x72xf32> to vector<32x72xf32>
    %c0_10 = arith.constant 0 : index
    %c0_11 = arith.constant 0 : index
    %c0_12 = arith.constant 0 : index
    %7 = vector.load %arg2[%c0_10, %c0_11, %c0_12] : memref<3x72x128xf32, #tpu.memory_space<vmem>>, vector<1x72x128xf32>
    %8 = vector.shape_cast %7 : vector<1x72x128xf32> to vector<72x128xf32>
    %cst_13 = arith.constant dense<0.000000e+00> : vector<32x128xf32>
    %9 = tpu.matmul %6, %8, %cst_13 {dimension_numbers = #tpu.dot_dimension_numbers<[1], [0], [0], [1], [0, 0, 1, 1], [], []>} : vector<32x72xf32>, vector<72x128xf32>, vector<32x128xf32> -> vector<32x128xf32>
    %10 = arith.addf %4, %9 : vector<32x128xf32>
    %c0_14 = arith.constant 0 : index
    %c1_15 = arith.constant 1 : index
    %c0_16 = arith.constant 0 : index
    %11 = vector.load %arg11[%c0_14, %c1_15, %c0_16] : memref<2x18x72xf32, #tpu.memory_space<vmem>>, vector<2x16x72xf32>
    %12 = vector.shape_cast %11 : vector<2x16x72xf32> to vector<32x72xf32>
    %c1_17 = arith.constant 1 : index
    %c0_18 = arith.constant 0 : index
    %c0_19 = arith.constant 0 : index
    %13 = vector.load %arg2[%c1_17, %c0_18, %c0_19] : memref<3x72x128xf32, #tpu.memory_space<vmem>>, vector<1x72x128xf32>
    %14 = vector.shape_cast %13 : vector<1x72x128xf32> to vector<72x128xf32>
    %cst_20 = arith.constant dense<0.000000e+00> : vector<32x128xf32>
    %15 = tpu.matmul %12, %14, %cst_20 {dimension_numbers = #tpu.dot_dimension_numbers<[1], [0], [0], [1], [0, 0, 1, 1], [], []>} : vector<32x72xf32>, vector<72x128xf32>, vector<32x128xf32> -> vector<32x128xf32>
    %16 = arith.addf %10, %15 : vector<32x128xf32>
    %c0_21 = arith.constant 0 : index
    %c2 = arith.constant 2 : index
    %c0_22 = arith.constant 0 : index
    %17 = vector.load %arg11[%c0_21, %c2, %c0_22] : memref<2x18x72xf32, #tpu.memory_space<vmem>>, vector<2x16x72xf32>
    %18 = vector.shape_cast %17 : vector<2x16x72xf32> to vector<32x72xf32>
    %c2_23 = arith.constant 2 : index
    %c0_24 = arith.constant 0 : index
    %c0_25 = arith.constant 0 : index
    %19 = vector.load %arg2[%c2_23, %c0_24, %c0_25] : memref<3x72x128xf32, #tpu.memory_space<vmem>>, vector<1x72x128xf32>
    %20 = vector.shape_cast %19 : vector<1x72x128xf32> to vector<72x128xf32>
    %cst_26 = arith.constant dense<0.000000e+00> : vector<32x128xf32>
    %21 = tpu.matmul %18, %20, %cst_26 {dimension_numbers = #tpu.dot_dimension_numbers<[1], [0], [0], [1], [0, 0, 1, 1], [], []>} : vector<32x72xf32>, vector<72x128xf32>, vector<32x128xf32> -> vector<32x128xf32>
    %22 = arith.addf %16, %21 : vector<32x128xf32>
    %c0_27 = arith.constant 0 : index
    %c0_28 = arith.constant 0 : index
    %23 = vector.load %arg3[%c0_27, %c0_28] : memref<1x128xf32, #tpu.memory_space<vmem>>, vector<1x128xf32>
    %24 = vector.broadcast %23 : vector<1x128xf32> to vector<32x128xf32>
    %25 = arith.addf %22, %24 : vector<32x128xf32>
    %cst_29 = arith.constant 0.000000e+00 : f32
    %26 = vector.broadcast %cst_29 : f32 to vector<32x128xf32>
    %27 = arith.cmpf oge, %25, %26 : vector<32x128xf32>
    %cst_30 = arith.constant 0.00999999977 : f32
    %28 = vector.broadcast %cst_30 : f32 to vector<32x128xf32>
    %29 = arith.mulf %28, %25 : vector<32x128xf32>
    %30 = arith.select %27, %25, %29 : vector<32x128xi1>, vector<32x128xf32>
    %c0_31 = arith.constant 0 : index
    %c0_32 = arith.constant 0 : index
    %31 = vector.load %arg4[%c0_31, %c0_32] : memref<1x128xf32, #tpu.memory_space<vmem>>, vector<1x128xf32>
    %32 = vector.broadcast %31 : vector<1x128xf32> to vector<32x128xf32>
    %33 = arith.mulf %30, %32 : vector<32x128xf32>
    %c0_33 = arith.constant 0 : index
    %c0_34 = arith.constant 0 : index
    %34 = vector.load %arg5[%c0_33, %c0_34] : memref<1x128xf32, #tpu.memory_space<vmem>>, vector<1x128xf32>
    %35 = vector.broadcast %34 : vector<1x128xf32> to vector<32x128xf32>
    %36 = arith.addf %33, %35 : vector<32x128xf32>
    %cst_35 = arith.constant 0.000000e+00 : f32
    %37 = vector.broadcast %cst_35 : f32 to vector<2x18x144xf32>
    %c0_36 = arith.constant 0 : index
    %c0_37 = arith.constant 0 : index
    %c0_38 = arith.constant 0 : index
    %38 = vector.load %arg12[%c0_36, %c0_37, %c0_38] : memref<2x18x144xf32, #tpu.memory_space<vmem>>, vector<2x18x144xf32>
    tpu.vector_store %arg12[%c0_36, %c0_37, %c0_38], %37 {strides = array<i32>} : memref<2x18x144xf32, #tpu.memory_space<vmem>>, vector<2x18x144xf32>,
    %39 = vector.shape_cast %36 : vector<32x128xf32> to vector<2x16x128xf32>
    %c0_39 = arith.constant 0 : index
    %c1_40 = arith.constant 1 : index
    %c8 = arith.constant 8 : index
    %40 = vector.load %arg12[%c0_39, %c1_40, %c8] : memref<2x18x144xf32, #tpu.memory_space<vmem>>, vector<2x16x128xf32>
    tpu.vector_store %arg12[%c0_39, %c1_40, %c8], %39 {strides = array<i32>} : memref<2x18x144xf32, #tpu.memory_space<vmem>>, vector<2x16x128xf32>,
    %cst_41 = arith.constant 0.000000e+00 : f32
    %41 = vector.broadcast %cst_41 : f32 to vector<32x128xf32>
    %c0_42 = arith.constant 0 : index
    %c0_43 = arith.constant 0 : index
    %c0_44 = arith.constant 0 : index
    %42 = vector.load %arg12[%c0_42, %c0_43, %c0_44] : memref<2x18x144xf32, #tpu.memory_space<vmem>>, vector<2x16x144xf32>
    %43 = vector.shape_cast %42 : vector<2x16x144xf32> to vector<32x144xf32>
    %c0_45 = arith.constant 0 : index
    %c0_46 = arith.constant 0 : index
    %c0_47 = arith.constant 0 : index
    %44 = vector.load %arg6[%c0_45, %c0_46, %c0_47] : memref<3x144x128xf32, #tpu.memory_space<vmem>>, vector<1x144x128xf32>
    %45 = vector.shape_cast %44 : vector<1x144x128xf32> to vector<144x128xf32>
    %cst_48 = arith.constant dense<0.000000e+00> : vector<32x128xf32>
    %46 = tpu.matmul %43, %45, %cst_48 {dimension_numbers = #tpu.dot_dimension_numbers<[1], [0], [0], [1], [0, 0, 1, 1], [], []>} : vector<32x144xf32>, vector<144x128xf32>, vector<32x128xf32> -> vector<32x128xf32>
    %47 = arith.addf %41, %46 : vector<32x128xf32>
    %c0_49 = arith.constant 0 : index
    %c1_50 = arith.constant 1 : index
    %c0_51 = arith.constant 0 : index
    %48 = vector.load %arg12[%c0_49, %c1_50, %c0_51] : memref<2x18x144xf32, #tpu.memory_space<vmem>>, vector<2x16x144xf32>
    %49 = vector.shape_cast %48 : vector<2x16x144xf32> to vector<32x144xf32>
    %c1_52 = arith.constant 1 : index
    %c0_53 = arith.constant 0 : index
    %c0_54 = arith.constant 0 : index
    %50 = vector.load %arg6[%c1_52, %c0_53, %c0_54] : memref<3x144x128xf32, #tpu.memory_space<vmem>>, vector<1x144x128xf32>
    %51 = vector.shape_cast %50 : vector<1x144x128xf32> to vector<144x128xf32>
    %cst_55 = arith.constant dense<0.000000e+00> : vector<32x128xf32>
    %52 = tpu.matmul %49, %51, %cst_55 {dimension_numbers = #tpu.dot_dimension_numbers<[1], [0], [0], [1], [0, 0, 1, 1], [], []>} : vector<32x144xf32>, vector<144x128xf32>, vector<32x128xf32> -> vector<32x128xf32>
    %53 = arith.addf %47, %52 : vector<32x128xf32>
    %c0_56 = arith.constant 0 : index
    %c2_57 = arith.constant 2 : index
    %c0_58 = arith.constant 0 : index
    %54 = vector.load %arg12[%c0_56, %c2_57, %c0_58] : memref<2x18x144xf32, #tpu.memory_space<vmem>>, vector<2x16x144xf32>
    %55 = vector.shape_cast %54 : vector<2x16x144xf32> to vector<32x144xf32>
    %c2_59 = arith.constant 2 : index
    %c0_60 = arith.constant 0 : index
    %c0_61 = arith.constant 0 : index
    %56 = vector.load %arg6[%c2_59, %c0_60, %c0_61] : memref<3x144x128xf32, #tpu.memory_space<vmem>>, vector<1x144x128xf32>
    %57 = vector.shape_cast %56 : vector<1x144x128xf32> to vector<144x128xf32>
    %cst_62 = arith.constant dense<0.000000e+00> : vector<32x128xf32>
    %58 = tpu.matmul %55, %57, %cst_62 {dimension_numbers = #tpu.dot_dimension_numbers<[1], [0], [0], [1], [0, 0, 1, 1], [], []>} : vector<32x144xf32>, vector<144x128xf32>, vector<32x128xf32> -> vector<32x128xf32>
    %59 = arith.addf %53, %58 : vector<32x128xf32>
    %c0_63 = arith.constant 0 : index
    %c0_64 = arith.constant 0 : index
    %60 = vector.load %arg7[%c0_63, %c0_64] : memref<1x128xf32, #tpu.memory_space<vmem>>, vector<1x128xf32>
    %61 = vector.broadcast %60 : vector<1x128xf32> to vector<32x128xf32>
    %62 = arith.addf %59, %61 : vector<32x128xf32>
    %cst_65 = arith.constant 0.000000e+00 : f32
    %63 = vector.broadcast %cst_65 : f32 to vector<32x128xf32>
    %64 = arith.cmpf oge, %62, %63 : vector<32x128xf32>
    %cst_66 = arith.constant 0.00999999977 : f32
    %65 = vector.broadcast %cst_66 : f32 to vector<32x128xf32>
    %66 = arith.mulf %65, %62 : vector<32x128xf32>
    %67 = arith.select %64, %62, %66 : vector<32x128xi1>, vector<32x128xf32>
    %c0_67 = arith.constant 0 : index
    %c0_68 = arith.constant 0 : index
    %68 = vector.load %arg8[%c0_67, %c0_68] : memref<1x128xf32, #tpu.memory_space<vmem>>, vector<1x128xf32>
    %69 = vector.broadcast %68 : vector<1x128xf32> to vector<32x128xf32>
    %70 = arith.mulf %67, %69 : vector<32x128xf32>
    %c0_69 = arith.constant 0 : index
    %c0_70 = arith.constant 0 : index
    %71 = vector.load %arg9[%c0_69, %c0_70] : memref<1x128xf32, #tpu.memory_space<vmem>>, vector<1x128xf32>
    %72 = vector.broadcast %71 : vector<1x128xf32> to vector<32x128xf32>
    %73 = arith.addf %70, %72 : vector<32x128xf32>
    %74 = vector.shape_cast %73 : vector<32x128xf32> to vector<2x16x128xf32>
    %c0_71 = arith.constant 0 : index
    %c0_72 = arith.constant 0 : index
    %c0_73 = arith.constant 0 : index
    %75 = vector.load %arg10[%c0_71, %c0_72, %c0_73] : memref<2x16x128xf32, #tpu.memory_space<vmem>>, vector<2x16x128xf32>
    tpu.vector_store %arg10[%c0_71, %c0_72, %c0_73], %74 {strides = array<i32>} : memref<2x16x128xf32, #tpu.memory_space<vmem>>, vector<2x16x128xf32>,
    return
  }
  func.func @transform_0(%arg0: i32) -> (i32, i32, i32) {
    %c0_i32 = arith.constant 0 : i32
    %c0_i32_0 = arith.constant 0 : i32
    %c0_i32_1 = arith.constant 0 : i32
    %c0_i32_2 = arith.constant 0 : i32
    return %c0_i32, %c0_i32_0, %c0_i32_1 : i32, i32, i32
  }
  func.func @transform_1(%arg0: i32) -> (i32, i32, i32) {
    %c0_i32 = arith.constant 0 : i32
    %c0_i32_0 = arith.constant 0 : i32
    %c0_i32_1 = arith.constant 0 : i32
    %c0_i32_2 = arith.constant 0 : i32
    return %c0_i32, %c0_i32_0, %c0_i32_1 : i32, i32, i32
  }
  func.func @transform_2(%arg0: i32) -> (i32, i32) {
    %c0_i32 = arith.constant 0 : i32
    %c0_i32_0 = arith.constant 0 : i32
    %c0_i32_1 = arith.constant 0 : i32
    return %c0_i32, %c0_i32_0 : i32, i32
  }
  func.func @transform_3(%arg0: i32) -> (i32, i32) {
    %c0_i32 = arith.constant 0 : i32
    %c0_i32_0 = arith.constant 0 : i32
    %c0_i32_1 = arith.constant 0 : i32
    return %c0_i32, %c0_i32_0 : i32, i32
  }
  func.func @transform_4(%arg0: i32) -> (i32, i32) {
    %c0_i32 = arith.constant 0 : i32
    %c0_i32_0 = arith.constant 0 : i32
    %c0_i32_1 = arith.constant 0 : i32
    return %c0_i32, %c0_i32_0 : i32, i32
  }
  func.func @transform_5(%arg0: i32) -> (i32, i32, i32) {
    %c0_i32 = arith.constant 0 : i32
    %c0_i32_0 = arith.constant 0 : i32
    %c0_i32_1 = arith.constant 0 : i32
    %c0_i32_2 = arith.constant 0 : i32
    return %c0_i32, %c0_i32_0, %c0_i32_1 : i32, i32, i32
  }
  func.func @transform_6(%arg0: i32) -> (i32, i32) {
    %c0_i32 = arith.constant 0 : i32
    %c0_i32_0 = arith.constant 0 : i32
    %c0_i32_1 = arith.constant 0 : i32
    return %c0_i32, %c0_i32_0 : i32, i32
  }
  func.func @transform_7(%arg0: i32) -> (i32, i32) {
    %c0_i32 = arith.constant 0 : i32
    %c0_i32_0 = arith.constant 0 : i32
    %c0_i32_1 = arith.constant 0 : i32
    return %c0_i32, %c0_i32_0 : i32, i32
  }
  func.func @transform_8(%arg0: i32) -> (i32, i32) {
    %c0_i32 = arith.constant 0 : i32
    %c0_i32_0 = arith.constant 0 : i32
    %c0_i32_1 = arith.constant 0 : i32
    return %c0_i32, %c0_i32_0 : i32, i32
  }
  func.func @transform_9(%arg0: i32) -> (i32, i32, i32) {
    %c0_i32 = arith.constant 0 : i32
    %c0_i32_0 = arith.constant 0 : i32
    %c0_i32_1 = arith.constant 0 : i32
    %c0_i32_2 = arith.constant 0 : i32
    return %c0_i32, %c0_i32_0, %c0_i32_1 : i32, i32, i32
  }
}

</mosaic_0001>

<bundles_post_ra>
// kernel: tile.33
= control target key start
LH: loop header
LB: loop body
LE: loop exit
PB: predicated region body
PF: predicated region fallthrough
CT: control target
= control target key end

     0   :  { %s28_s0 = inlined_call_operand.vmem [shape: f32[8], index: 0, kind: input, shape index: {}]   ;;  %s29_s1 = inlined_call_operand.vmem [shape: f32[16,8], index: 1, kind: output, shape index: {}]  }
   0x1   :  { %v4_v0 = vld [vmem:[%s28_s0] ss:$0 sm:$0xff] }
   0x2   :  { %5 = vst [vmem:[%s29_s1] sm:$0xff] %v4_v0 }
   0x3   :  { %8 = vst [vmem:[%s29_s1 + $0x8] sm:$0xff] %v4_v0 }

// kernel: tile.34
= control target key start
LH: loop header
LB: loop body
LE: loop exit
PB: predicated region body
PF: predicated region fallthrough
CT: control target
= control target key end

     0   :  { %s131_s10 = smov 120   ;;  %s132_s11 = smov 104   ;;  %vm3_vm0 = vcmask 64512   ;;  %vm9_vm1 = vcmask 1048512   ;;  %vm15_vm2 = vcmask 982912   ;;  %vm21_vm3 = vcmask 917312   ;;  %s207_s0 = inlined_call_operand.vmem [shape: f32[16,8], index: 0, kind: input, shape index: {}]   ;;  %s208_s1 = inlined_call_operand.vmem [shape: f32[1,128], index: 1, kind: output, shape index: {}]  }
   0x1   :  { %v101_v0 = vld [vmem:[%s207_s0 + $0xf] sm:$0x1]   ;;  %v103_v1 = vld [vmem:[%s207_s0 + $0xd] sm:$0x1]   ;;  %v105_v2 = vld [vmem:[%s207_s0 + $0xb] sm:$0x1]  }
   0x2   :  { %7 = vrot.lane.b32.xlu0 %v101_v0, %s131_s10  ;;  %19 = vrot.lane.b32.xlu1 %v103_v1, %s132_s11  ;;  %s133_s14 = smov 88   ;;  %v102_v3 = vld [vmem:[%s207_s0 + $0xe] sm:$0x1]   ;;  %v104_v4 = vld [vmem:[%s207_s0 + $0xc] sm:$0x1]   ;;  %s134_s19 = smov 112  }
   0x3   :  { %31 = vrot.lane.b32.xlu2 %v105_v2, %s133_s14  ;;  %s135_s20 = smov 96   ;;  %v106_v5 = vld [vmem:[%s207_s0 + $0xa] sm:$0x1]   ;;  %s136_s23 = smov 80   ;;  %v107_v6 = vld [vmem:[%s207_s0 + $0x9] sm:$0x1]  }
   0x4   :  { %v108_v7 = vld [vmem:[%s207_s0 + $0x8] sm:$0x1]   ;;  %s137_s28 = smov 72   ;;  %s138_s29 = smov 64   ;;  %v109_v8 = vld [vmem:[%s207_s0 + $0x7] sm:$0x1]  }
   0x5   :  { %s139_s3 = smov 56   ;;  %v110_v9 = vld [vmem:[%s207_s0 + $0x6] sm:$0x1]   ;;  %v111_v10 = vld [vmem:[%s207_s0 + $0x5] sm:$0x1]   ;;  %s140_s8 = smov 48  }
   0x6   :  { %s141_s9 = smov 40   ;;  %v112_v11 = vld [vmem:[%s207_s0 + $0x4] sm:$0x1]   ;;  %s142_s12 = smov 32   ;;  %v113_v12 = vld [vmem:[%s207_s0 + $0x3] sm:$0x1]  }
   0x7   :  { %v114_v13 = vld [vmem:[%s207_s0 + $0x2] sm:$0x1]   ;;  %s143_s17 = smov 24   ;;  %s144_s18 = smov 16   ;;  %v115_v14 = vld [vmem:[%s207_s0 + $0x1] sm:$0x1]  }
   0x8   :  { %s145_s21 = smov 8   ;;  %v2_v15 = vld [vmem:[%s207_s0] sm:$0x1]   ;;  %vm27_vm4 = vcmask 851712   ;;  %vm33_vm5 = vcmask 786112   ;;  %vm39_vm6 = vcmask 720512  }
   0x9   :  { %4 = vst.msk [vmem:[#allocation0] sm:$0x1] %vm3_vm0, %v2_v15   ;;  %vm45_vm7 = vcmask 654912   ;;  %vm51_vm8 = vcmask 589312   ;;  %vm57_vm9 = vcmask 523712   ;;  %vm63_vm10 = vcmask 458112  }
   0xa   :  { %13 = vrot.lane.b32.xlu0 %v102_v3, %s134_s19  ;;  %25 = vrot.lane.b32.xlu1 %v104_v4, %s135_s20  ;;  %vm69_vm11 = vcmask 392512   ;;  %vm75_vm12 = vcmask 326912   ;;  %vm81_vm13 = vcmask 261312   ;;  %vm87_vm14 = vcmask 195712  }
   0xb   :  { %37 = vrot.lane.b32.xlu2 %v106_v5, %s136_s23  ;;  %vm93_vm15 = vcmask 130112  }
  0x12   :  { %43 = vrot.lane.b32.xlu0 %v107_v6, %s137_s28  ;;  %49 = vrot.lane.b32.xlu1 %v108_v7, %s138_s29 }
  0x13   :  { %55 = vrot.lane.b32.xlu2 %v109_v8, %s139_s3 }
  0x1a   :  { %61 = vrot.lane.b32.xlu0 %v110_v9, %s140_s8  ;;  %67 = vrot.lane.b32.xlu1 %v111_v10, %s141_s9 }
  0x1b   :  { %73 = vrot.lane.b32.xlu2 %v112_v11, %s142_s12 }
  0x22   :  { %79 = vrot.lane.b32.xlu0 %v113_v12, %s143_s17  ;;  %85 = vrot.lane.b32.xlu1 %v114_v13, %s144_s18 }
  0x23   :  { %91 = vrot.lane.b32.xlu2 %v115_v14, %s145_s21 }
  0x5d   :  { %v32_v16 = vpop.permute.xlu2 %31  }
  0x65   :  { %v38_v17 = vpop.permute.xlu2 %37  }
  0x6d   :  { %v56_v18 = vpop.permute.xlu2 %55  }
  0x74   :  { %v8_v19 = vpop.permute.xlu0 %7   ;;  %v20_v20 = vpop.permute.xlu1 %19  }
  0x75   :  { %10 = vst.msk [vmem:[#allocation0] sm:$0x1] %vm9_vm1, %v8_v19   ;;  %v74_v21 = vpop.permute.xlu2 %73  }
  0x7c   :  { %v14_v22 = vpop.permute.xlu0 %13   ;;  %v26_v23 = vpop.permute.xlu1 %25  }
  0x7d   :  { %16 = vst.msk [vmem:[#allocation0] sm:$0x1] %vm15_vm2, %v14_v22   ;;  %v92_v24 = vpop.permute.xlu2 %91  }
  0x7e   :  { %22 = vst.msk [vmem:[#allocation0] sm:$0x1] %vm21_vm3, %v20_v20  }
  0x7f   :  { %28 = vst.msk [vmem:[#allocation0] sm:$0x1] %vm27_vm4, %v26_v23  }
  0x80   :  { %34 = vst.msk [vmem:[#allocation0] sm:$0x1] %vm33_vm5, %v32_v16  }
  0x81   :  { %40 = vst.msk [vmem:[#allocation0] sm:$0x1] %vm39_vm6, %v38_v17  }
  0x84   :  { %v44_v25 = vpop.permute.xlu0 %43   ;;  %v50_v26 = vpop.permute.xlu1 %49  }
  0x85   :  { %46 = vst.msk [vmem:[#allocation0] sm:$0x1] %vm45_vm7, %v44_v25  }
  0x86   :  { %52 = vst.msk [vmem:[#allocation0] sm:$0x1] %vm51_vm8, %v50_v26  }
  0x87   :  { %58 = vst.msk [vmem:[#allocation0] sm:$0x1] %vm57_vm9, %v56_v18  }
  0x8c   :  { %v62_v27 = vpop.permute.xlu0 %61   ;;  %v68_v28 = vpop.permute.xlu1 %67  }
  0x8d   :  { %64 = vst.msk [vmem:[#allocation0] sm:$0x1] %vm63_vm10, %v62_v27  }
  0x8e   :  { %70 = vst.msk [vmem:[#allocation0] sm:$0x1] %vm69_vm11, %v68_v28  }
  0x8f   :  { %76 = vst.msk [vmem:[#allocation0] sm:$0x1] %vm75_vm12, %v74_v21  }
  0x94   :  { %v80_v29 = vpop.permute.xlu0 %79   ;;  %v86_v30 = vpop.permute.xlu1 %85  }
  0x95   :  { %82 = vst.msk [vmem:[#allocation0] sm:$0x1] %vm81_vm13, %v80_v29  }
  0x96   :  { %88 = vst.msk [vmem:[#allocation0] sm:$0x1] %vm87_vm14, %v86_v30  }
  0x97   :  { %94 = vst.msk [vmem:[#allocation0] sm:$0x1] %vm93_vm15, %v92_v24  }
  0x9e   :  { %v97_v31 = vld [vmem:[#allocation0] sm:$0x1] }
  0x9f   :  { %100 = vst [vmem:[%s208_s1] sm:$0x1] %v97_v31 }

// kernel: conv_stack.1
= control target key start
LH: loop header
LB: loop body
LE: loop exit
PB: predicated region body
PF: predicated region fallthrough
CT: control target
= control target key end

     0   :  { %vm32_vm0 = vcmask 588800   ;;  %v819_v2 = vmov 0.0   ;;  %s820_s13 = smov 4   ;;  %vm35_vm1 = vcmask 582656   ;;  %vm60_vm2 = vcmask 556064   ;;  %s1280_s0 = inlined_call_operand.vmem [shape: f32[2,16,64], index: 0, kind: input, shape index: {}]   ;;  %s1281_s1 = inlined_call_operand.vmem [shape: f32[3,72,128], index: 1, kind: input, shape index: {}]   ;;  %s1282_s2 = inlined_call_operand.vmem [shape: f32[1,128], index: 2, kind: input, shape index: {}]   ;;  %s1283_s3 = inlined_call_operand.vmem [shape: f32[1,128], index: 3, kind: input, shape index: {}]   ;;  %s1284_s4 = inlined_call_operand.vmem [shape: f32[1,128], index: 4, kind: input, shape index: {}]   ;;  %s1285_s5 = inlined_call_operand.vmem [shape: f32[3,144,128], index: 5, kind: input, shape index: {}]   ;;  %s1286_s6 = inlined_call_operand.vmem [shape: f32[1,128], index: 6, kind: input, shape index: {}]   ;;  %s1287_s7 = inlined_call_operand.vmem [shape: f32[1,128], index: 7, kind: input, shape index: {}]   ;;  %s1288_s8 = inlined_call_operand.vmem [shape: f32[1,128], index: 8, kind: input, shape index: {}]   ;;  %s1289_s9 = inlined_call_operand.vmem [shape: f32[2,16,128], index: 9, kind: output, shape index: {}]  }
   0x1   :  { %v40_v0 = vld [vmem:[%s1280_s0] sm:$0xff]  ;;  %v42_v1 = vld [vmem:[%s1280_s0 + $0x10] sm:$0xff]  ;;  %33 = vst.msk [vmem:[#allocation2] sm:$0xff] %vm32_vm0, %v819_v2  ;;  %v736_v3 = vld [vmem:[%s1281_s1 + $0x88] sm:$0xff]  ;;  %vm270_vm4 = vcmask 130048   ;;  %vm287_vm6 = vcmask 1040384  }
   0x2   :  { %48 = vrot.lane.b32.xlu0 %v40_v0, %s820_s13  ;;  %52 = vrot.lane.b32.xlu1 %v42_v1, %s820_s13  ;;  %34 = vst.msk [vmem:[#allocation2 + $0x8] sm:$0xff] %vm32_vm0, %v819_v2  ;;  %v77_v4 = vld [vmem:[%s1281_s1 + $0x40] sm:$0xff]  ;;  %v76_v6 = vld [vmem:[%s1281_s1 + $0x38] sm:$0xff]  ;;  %vm275_vm9 = vcmask 123904   ;;  %vm312_vm10 = vcmask 1047617   ;;  %vm314_vm11 = vcmask 64513  }
   0x3   :  { %111 = vmatpush.msra.mxu0 %v736_v3  ;;  %v735_v5 = vld [vmem:[%s1281_s1 + $0x80] sm:$0xff]  ;;  %37 = vst.msk [vmem:[#allocation2 + $0x18] sm:$0xff] %vm32_vm0, %v819_v2  ;;  %152 = vmatpush.msra.mxu1 %v77_v4  ;;  %v734_v7 = vld [vmem:[%s1281_s1 + $0x78] sm:$0xff]  ;;  %v75_v8 = vld [vmem:[%s1281_s1 + $0x30] sm:$0xff]  ;;  %vm316_vm12 = vcmask 1047616   ;;  %vm318_vm13 = vcmask 64512  }
   0x4   :  { %38 = vst.msk [vmem:[#allocation2 + $0x20] sm:$0xff] %vm32_vm0, %v819_v2  ;;  %v733_v9 = vld [vmem:[%s1281_s1 + $0x70] sm:$0xff]  ;;  %v41_v11 = vld [vmem:[%s1280_s0 + $0x8] sm:$0xff]  ;;  %v43_v12 = vld [vmem:[%s1280_s0 + $0x18] sm:$0xff]  ;;  %vm376_vm14 = vcmask 1046528   ;;  %vm320_vm15 = vcmask 1040448  }
   0x5   :  { %112 = vmatpush.msra.mxu0 %v735_v5  ;;  %269 = vst [vmem:[#allocation3] sm:$0xff] %v819_v2  ;;  %153 = vmatpush.msra.mxu1 %v76_v6  ;;  %v753_v10 = vld [vmem:[%s1281_s1 + $0xd0] sm:$0xff]  ;;  %v74_v13 = vld [vmem:[%s1281_s1 + $0x28] sm:$0xff]  ;;  %v73_v15 = vld [vmem:[%s1281_s1 + $0x20] sm:$0xff] }
   0x6   :  { %272 = vst [vmem:[#allocation3 + $0x10] sm:$0xff] %v819_v2  ;;  %207 = vmatpush.msra.mxu2 %v753_v10  ;;  %v732_v14 = vld [vmem:[%s1281_s1 + $0x68] sm:$0xff]  ;;  %v731_v16 = vld [vmem:[%s1281_s1 + $0x60] sm:$0xff]  ;;  %v72_v17 = vld [vmem:[%s1281_s1 + $0x18] sm:$0xff] }
   0x7   :  { %113 = vmatpush.msra.mxu0 %v734_v7  ;;  %274 = vst [vmem:[#allocation3 + $0x20] sm:$0x3] %v819_v2  ;;  %154 = vmatpush.msra.mxu1 %v75_v8  ;;  %v752_v18 = vld [vmem:[%s1281_s1 + $0xc8] sm:$0xff]  ;;  %v730_v19 = vld [vmem:[%s1281_s1 + $0x58] sm:$0xff]  ;;  %v71_v20 = vld [vmem:[%s1281_s1 + $0x10] sm:$0xff] }
   0x8   :  { %277 = vst [vmem:[#allocation3 + $0x30] sm:$0xff] %v819_v2  ;;  %v751_v21 = vld [vmem:[%s1281_s1 + $0xc0] sm:$0xff]  ;;  %208 = vmatpush.msra.mxu2 %v752_v18  ;;  %v729_v22 = vld [vmem:[%s1281_s1 + $0x50] sm:$0xff]  ;;  %v70_v23 = vld [vmem:[%s1281_s1 + $0x8] sm:$0xff] }
   0x9   :  { %114 = vmatpush.msra.mxu0 %v733_v9  ;;  %279 = vst [vmem:[#allocation3 + $0x40] sm:$0xff] %v819_v2  ;;  %155 = vmatpush.msra.mxu1 %v74_v13  ;;  %v750_v24 = vld [vmem:[%s1281_s1 + $0xb8] sm:$0xff]  ;;  %v728_v25 = vld [vmem:[%s1281_s1 + $0x48] sm:$0xff]  ;;  %v69_v26 = vld [vmem:[%s1281_s1] sm:$0xff] }
   0xa   :  { %50 = vrot.lane.b32.xlu0 %v41_v11, %s820_s13  ;;  %54 = vrot.lane.b32.xlu1 %v43_v12, %s820_s13  ;;  %281 = vst [vmem:[#allocation3 + $0x50] sm:$0x3] %v819_v2  ;;  %v749_v27 = vld [vmem:[%s1281_s1 + $0xb0] sm:$0xff]  ;;  %v748_v28 = vld [vmem:[%s1281_s1 + $0xa8] sm:$0xff]  ;;  %s821_s13 = smov 8  }
   0xb   :  { %115 = vmatpush.msra.mxu0 %v732_v14  ;;  %156 = vmatpush.msra.mxu1 %v73_v15  ;;  %36 = vst.msk [vmem:[#allocation2 + $0x10] sm:$0x3] %vm35_vm1, %v819_v2  ;;  %v747_v29 = vld [vmem:[%s1281_s1 + $0xa0] sm:$0xff]  ;;  %v746_v30 = vld [vmem:[%s1281_s1 + $0x98] sm:$0xff]  ;;  %v745_v31 = vld [vmem:[%s1281_s1 + $0x90] sm:$0xff] }
   0xc   :  { %39 = vst.msk [vmem:[#allocation2 + $0x28] sm:$0x3] %vm35_vm1, %v819_v2  ;;  %209 = vmatpush.msra.mxu2 %v751_v21  ;;  %v1000_v52 = vld [vmem:[%s1282_s2] ss:$0 sm:$0xff]  ;;  %v353_v62 = vld [vmem:[%s1285_s5 + $0x78] sm:$0xff]  ;;  %v352_v63 = vld [vmem:[%s1285_s5 + $0x70] sm:$0xff] }
   0xd   :  { %116 = vmatpush.msra.mxu0 %v731_v16  ;;  %157 = vmatpush.msra.mxu1 %v72_v17  ;;  %v1006_v57 = vld [vmem:[%s1283_s3] ss:$0 sm:$0xff]  ;;  %271 = vst.msk [vmem:[#allocation3 + $0x8] sm:$0xff] %vm270_vm4, %v819_v2  ;;  %v351_v4 = vld [vmem:[%s1285_s5 + $0x68] sm:$0xff]  ;;  %v771_v13 = vld [vmem:[%s1285_s5 + $0xf8] sm:$0xff]  ;;  %vm570_vm1 = vcmask 1045504  }
   0xe   :  { %210 = vmatpush.msra.mxu2 %v750_v24  ;;  %v1011_v59 = vld [vmem:[%s1284_s4] ss:$0 sm:$0xff]  ;;  %v773_v5 = vld [vmem:[%s1285_s5 + $0x108] sm:$0xff]  ;;  %273 = vst.msk [vmem:[#allocation3 + $0x18] sm:$0xff] %vm270_vm4, %v819_v2  ;;  %v349_v15 = vld [vmem:[%s1285_s5 + $0x58] sm:$0xff] }
   0xf   :  { %117 = vmatpush.msra.mxu0 %v730_v19  ;;  %158 = vmatpush.msra.mxu1 %v71_v20  ;;  %v772_v6 = vld [vmem:[%s1285_s5 + $0x100] sm:$0xff]  ;;  %278 = vst.msk [vmem:[#allocation3 + $0x38] sm:$0xff] %vm270_vm4, %v819_v2  ;;  %v770_v16 = vld [vmem:[%s1285_s5 + $0xf0] sm:$0xff]  ;;  %v347_v24 = vld [vmem:[%s1285_s5 + $0x48] sm:$0xff] }
  0x10   :  { %211 = vmatpush.msra.mxu2 %v749_v27  ;;  %428 = vmatpush.msra.mxu3 %v773_v5  ;;  %v350_v11 = vld [vmem:[%s1285_s5 + $0x60] sm:$0xff]  ;;  %280 = vst.msk [vmem:[#allocation3 + $0x48] sm:$0xff] %vm270_vm4, %v819_v2  ;;  %v348_v19 = vld [vmem:[%s1285_s5 + $0x50] sm:$0xff] }
  0x11   :  { %118 = vmatpush.msra.mxu0 %v729_v22  ;;  %159 = vmatpush.msra.mxu1 %v70_v23  ;;  %v769_v22 = vld [vmem:[%s1285_s5 + $0xe8] sm:$0xff]  ;;  %v758_v5 = vld [vmem:[%s1285_s5 + $0x90] sm:$0xff]  ;;  %276 = vst.msk [vmem:[#allocation3 + $0x28] sm:$0x3] %vm275_vm9, %v819_v2 }
  0x12   :  { %212 = vmatpush.msra.mxu2 %v748_v28  ;;  %429 = vmatpush.msra.mxu3 %v772_v6  ;;  %v346_v28 = vld [vmem:[%s1285_s5 + $0x40] sm:$0xff]  ;;  %v774_v6 = vld [vmem:[%s1285_s5 + $0x110] sm:$0xff]  ;;  %282 = vst.msk [vmem:[#allocation3 + $0x58] sm:$0x3] %vm275_vm9, %v819_v2  ;;  %v797_v2 = vld [vmem:[%s1285_s5 + $0x188] sm:$0xff] }
  0x13   :  { %119 = vmatpush.msra.mxu0 %v728_v25  ;;  %160 = vmatpush.msra.mxu1 %v69_v26  ;;  %v768_v26 = vld [vmem:[%s1285_s5 + $0xe0] sm:$0xff] }
  0x14   :  { %213 = vmatpush.msra.mxu2 %v747_v29  ;;  %430 = vmatpush.msra.mxu3 %v771_v13  ;;  %v796_v13 = vld [vmem:[%s1285_s5 + $0x180] sm:$0xff] }
  0x15   :  { %496 = vmatpush.msrb.mxu1 %v353_v62  ;;  %v763_v62 = vld [vmem:[%s1285_s5 + $0xb8] sm:$0xff] }
  0x16   :  { %214 = vmatpush.msra.mxu2 %v746_v30  ;;  %431 = vmatpush.msra.mxu3 %v770_v16 }
  0x17   :  { %497 = vmatpush.msrb.mxu1 %v352_v63  ;;  %v762_v63 = vld [vmem:[%s1285_s5 + $0xb0] sm:$0xff] }
  0x18   :  { %215 = vmatpush.msra.mxu2 %v745_v31  ;;  %432 = vmatpush.msra.mxu3 %v769_v22 }
  0x19   :  { %498 = vmatpush.msrb.mxu1 %v351_v4  ;;  %v759_v4 = vld [vmem:[%s1285_s5 + $0x98] sm:$0xff] }
  0x1a   :  { %433 = vmatpush.msra.mxu3 %v768_v26 }
  0x1b   :  { %499 = vmatpush.msrb.mxu1 %v350_v11 }
  0x1d   :  { %500 = vmatpush.msrb.mxu1 %v349_v15  ;;  %v794_v15 = vld [vmem:[%s1285_s5 + $0x170] sm:$0xff] }
  0x1f   :  { %501 = vmatpush.msrb.mxu1 %v348_v19 }
  0x21   :  { %502 = vmatpush.msrb.mxu1 %v347_v24 }
  0x23   :  { %503 = vmatpush.msrb.mxu1 %v346_v28  ;;  %v791_v28 = vld [vmem:[%s1285_s5 + $0x158] sm:$0xff] }
  0x74   :  { %v49_v32 = vpop.permute.xlu0 %48  ;;  %v53_v33 = vpop.permute.xlu1 %52 }
  0x75   :  { %61 = vst.msk [vmem:[#allocation2 + $0x1] sm:$0xff] %vm60_vm2, %v49_v32 }
  0x76   :  { %63 = vst.msk [vmem:[#allocation2 + $0x19] sm:$0xff] %vm60_vm2, %v53_v33  ;;  %v345_v33 = vld [vmem:[%s1285_s5 + $0x38] sm:$0xff] }
  0x77   :  { %504 = vmatpush.msrb.mxu1 %v345_v33  ;;  %v801_v33 = vld [vmem:[%s1285_s5 + $0x1a8] sm:$0xff] }
  0x7c   :  { %v51_v34 = vpop.permute.xlu0 %50  ;;  %v78_v35 = vld [vmem:[#allocation2 + $0x1] sm:$0xff]  ;;  %v55_v37 = vpop.permute.xlu1 %54 }
  0x7d   :  { %v65_v36 = vld [vmem:[#allocation2] sm:$0xff]  ;;  %62 = vst.msk [vmem:[#allocation2 + $0x9] sm:$0xff] %vm60_vm2, %v51_v34  ;;  %737 = vmatmul.msk.f32.vlgmr.msra.gmra.mxu0 %vm32_vm0, %v78_v35  ;;  %v67_v42 = vld [vmem:[#allocation2 + $0x18] sm:$0xff] }
  0x7e   :  { %741 = vmatmul.msk.f32.vlgmr.msra.gmra.mxu1 %vm32_vm0, %v65_v36  ;;  %64 = vst.msk [vmem:[#allocation2 + $0x21] sm:$0xff] %vm60_vm2, %v55_v37  ;;  %v80_v41 = vld [vmem:[#allocation2 + $0x19] sm:$0xff]  ;;  %v344_v37 = vld [vmem:[%s1285_s5 + $0x30] sm:$0xff] }
  0x7f   :  { %505 = vmatpush.msrb.mxu1 %v344_v37  ;;  %v785_v37 = vld [vmem:[%s1285_s5 + $0x128] sm:$0xff] }
  0x84   :  { %v79_v38 = vld [vmem:[#allocation2 + $0x9] sm:$0xff] }
  0x85   :  { %v66_v39 = vld [vmem:[#allocation2 + $0x8] sm:$0xff]  ;;  %738 = vmatmul.msk.f32.gmra.mxu0 %vm32_vm0, %v79_v38  ;;  %v68_v45 = vld [vmem:[#allocation2 + $0x20] sm:$0xff] }
  0x86   :  { %v174_v40 = vld [vmem:[#allocation2 + $0x2] sm:$0xff]  ;;  %742 = vmatmul.msk.f32.gmra.mxu1 %vm32_vm0, %v66_v39  ;;  %v175_v43 = vld [vmem:[#allocation2 + $0xa] sm:$0xff]  ;;  %v176_v46 = vld [vmem:[#allocation2 + $0x1a] sm:$0xff] }
  0x87   :  { %754 = vmatmul.msk.f32.vlgmr.msra.gmra.mxu2 %vm32_vm0, %v174_v40  ;;  %v81_v44 = vld [vmem:[#allocation2 + $0x21] sm:$0xff] }
  0x88   :  { %v177_v47 = vld [vmem:[#allocation2 + $0x22] sm:$0xff] }
  0x8d   :  { %739 = vmatmul.msk.f32.gmra.mxu0 %vm32_vm0, %v80_v41  ;;  %v343_v41 = vld [vmem:[%s1285_s5 + $0x28] sm:$0xff] }
  0x8e   :  { %743 = vmatmul.msk.f32.gmra.mxu1 %vm32_vm0, %v67_v42 }
  0x8f   :  { %755 = vmatmul.msk.f32.gmra.mxu2 %vm32_vm0, %v175_v43  ;;  %506 = vmatpush.msrb.mxu1 %v343_v41 }
  0x95   :  { %740 = vmatmul.msk.f32.gmra.mxu0 %vm32_vm0, %v81_v44  ;;  %v342_v44 = vld [vmem:[%s1285_s5 + $0x20] sm:$0xff] }
  0x96   :  { %744 = vmatmul.msk.f32.gmra.mxu1 %vm32_vm0, %v68_v45 }
  0x97   :  { %756 = vmatmul.msk.f32.gmra.mxu2 %vm32_vm0, %v176_v46  ;;  %507 = vmatpush.msrb.mxu1 %v342_v44 }
  0x9f   :  { %757 = vmatmul.msk.f32.gmra.mxu2 %vm32_vm0, %v177_v47  ;;  %vm322_vm0 = vcmask 57344  }
  0xfa   :  { %v121_v48 = vpop.f32.mrf.mxu0 }
  0xfb   :  { %v162_v49 = vpop.f32.mrf.mxu1 }
  0xfc   :  { %v163_v50 = vadd.f32 %v162_v49, %v121_v48 }
 0x102   :  { %v124_v51 = vpop.f32.mrf.mxu0 }
 0x103   :  { %v165_v53 = vpop.f32.mrf.mxu1 }
 0x104   :  { %v166_v60 = vadd.f32 %v165_v53, %v124_v51  ;;  %v341_v53 = vld [vmem:[%s1285_s5 + $0x18] sm:$0xff] }
 0x105   :  { %508 = vmatpush.msrb.mxu1 %v341_v53 }
 0x10a   :  { %v217_v54 = vpop.f32.mrf.mxu2  ;;  %v127_v7 = vpop.f32.mrf.mxu0 }
 0x10b   :  { %v229_v55 = vadd.f32 %v217_v54, %v163_v50  ;;  %v168_v8 = vpop.f32.mrf.mxu1  ;;  %v766_v54 = vld [vmem:[%s1285_s5 + $0xd0] sm:$0xff] }
 0x10c   :  { %v169_v17 = vadd.f32 %v168_v8, %v127_v7  ;;  %v799_v8 = vld [vmem:[%s1285_s5 + $0x198] sm:$0xff] }
 0x10d   :  { %v237_v56 = vadd.f32 %v1000_v52, %v229_v55  ;;  %v340_v55 = vld [vmem:[%s1285_s5 + $0x10] sm:$0xff] }
 0x10e   :  { %509 = vmatpush.msrb.mxu1 %v340_v55 }
 0x10f   :  { %vm241_vm3 = vcmp.ge.f32.partialorder %v237_v56, 0.0  ;;  %v245_v58 = vmul.f32 0.01, %v237_v56 }
 0x111   :  { %v249_v61 = vsel %vm241_vm3, %v237_v56, %v245_v58  ;;  %v765_v56 = vld [vmem:[%s1285_s5 + $0xc8] sm:$0xff] }
 0x112   :  { %v220_v0 = vpop.f32.mrf.mxu2  ;;  %v257_v1 = vmul.f32 %v1006_v57, %v249_v61  ;;  %v130_v29 = vpop.f32.mrf.mxu0  ;;  %v355_v58 = vld [vmem:[%s1285_s5 + $0x88] sm:$0xff]  ;;  %v338_v61 = vld [vmem:[%s1285_s5] sm:$0xff] }
 0x113   :  { %v230_v3 = vadd.f32 %v220_v0, %v166_v60  ;;  %v171_v30 = vpop.f32.mrf.mxu1  ;;  %539 = vmatpush.msrb.mxu2 %v355_v58  ;;  %v764_v60 = vld [vmem:[%s1285_s5 + $0xc0] sm:$0xff]  ;;  %v761_v0 = vld [vmem:[%s1285_s5 + $0xa8] sm:$0xff] }
 0x114   :  { %v265_v9 = vadd.f32 %v1011_v59, %v257_v1  ;;  %v172_v35 = vadd.f32 %v171_v30, %v130_v29  ;;  %v775_v1 = vld [vmem:[%s1285_s5 + $0x118] sm:$0xff]  ;;  %v790_v29 = vld [vmem:[%s1285_s5 + $0x150] sm:$0xff]  ;;  %v789_v30 = vld [vmem:[%s1285_s5 + $0x148] sm:$0xff] }
 0x115   :  { %v238_v10 = vadd.f32 %v1000_v52, %v230_v3  ;;  %471 = vmatpush.msrb.mxu0 %v775_v1  ;;  %v760_v3 = vld [vmem:[%s1285_s5 + $0xa0] sm:$0xff] }
 0x116   :  { %v288_v12 = vrot.slane %v265_v9, 7  ;;  %v798_v9 = vld [vmem:[%s1285_s5 + $0x190] sm:$0xff] }
 0x117   :  { %vm242_vm5 = vcmp.ge.f32.partialorder %v238_v10, 0.0  ;;  %v246_v14 = vmul.f32 0.01, %v238_v10  ;;  %472 = vmatpush.msrb.mxu0 %v774_v6 }
 0x118   :  { %294 = vrot.lane.b32.xlu2 %v288_v12, %s821_s13 }
 0x119   :  { %v250_v18 = vsel %vm242_vm5, %v238_v10, %v246_v14  ;;  %v795_v14 = vld [vmem:[%s1285_s5 + $0x178] sm:$0xff]  ;;  %665 = vmatpush.msra.mxu0 %v801_v33 }
 0x11a   :  { %v223_v20 = vpop.f32.mrf.mxu2  ;;  %v258_v21 = vmul.f32 %v1006_v57, %v250_v18 }
 0x11b   :  { %v231_v23 = vadd.f32 %v223_v20, %v169_v17  ;;  %v793_v17 = vld [vmem:[%s1285_s5 + $0x168] sm:$0xff] }
 0x11c   :  { %v266_v25 = vadd.f32 %v1011_v59, %v258_v21 }
 0x11d   :  { %v239_v27 = vadd.f32 %v1000_v52, %v231_v23  ;;  %v792_v23 = vld [vmem:[%s1285_s5 + $0x160] sm:$0xff] }
 0x11e   :  { %v289_v31 = vrot.slane %v266_v25, 7 }
 0x11f   :  { %vm243_vm7 = vcmp.ge.f32.partialorder %v239_v27, 0.0  ;;  %v247_v32 = vmul.f32 0.01, %v239_v27 }
 0x120   :  { %298 = vrot.lane.b32.xlu0 %v289_v31, %s821_s13  ;;  %v290_v34 = vsel %vm287_vm6, %v288_v12, %v289_v31 }
 0x121   :  { %v251_v36 = vsel %vm243_vm7, %v239_v27, %v247_v32  ;;  %296 = vrot.lane.b32.xlu2 %v290_v34, %s821_s13  ;;  %v788_v32 = vld [vmem:[%s1285_s5 + $0x140] sm:$0xff]  ;;  %v787_v34 = vld [vmem:[%s1285_s5 + $0x138] sm:$0xff] }
 0x122   :  { %v226_v38 = vpop.f32.mrf.mxu2  ;;  %v259_v39 = vmul.f32 %v1006_v57, %v251_v36  ;;  %v800_v36 = vld [vmem:[%s1285_s5 + $0x1a0] sm:$0xff] }
 0x123   :  { %v232_v40 = vadd.f32 %v226_v38, %v172_v35  ;;  %v786_v35 = vld [vmem:[%s1285_s5 + $0x130] sm:$0xff]  ;;  %666 = vmatpush.msra.mxu0 %v800_v36 }
 0x124   :  { %v267_v42 = vadd.f32 %v1011_v59, %v259_v39  ;;  %v784_v39 = vld [vmem:[%s1285_s5 + $0x120] sm:$0xff] }
 0x125   :  { %v240_v43 = vadd.f32 %v1000_v52, %v232_v40  ;;  %v767_v52 = vld [vmem:[%s1285_s5 + $0xd8] sm:$0xff] }
 0x126   :  { %v291_v45 = vrot.slane %v267_v42, 7  ;;  %434 = vmatpush.msra.mxu3 %v767_v52 }
 0x127   :  { %vm244_vm8 = vcmp.ge.f32.partialorder %v240_v43, 0.0  ;;  %v248_v46 = vmul.f32 0.01, %v240_v43 }
 0x128   :  { %300 = vrot.lane.b32.xlu1 %v291_v45, %s821_s13  ;;  %435 = vmatpush.msra.mxu3 %v766_v54 }
 0x129   :  { %v252_v47 = vsel %vm244_vm8, %v240_v43, %v248_v46 }
 0x12a   :  { %v260_v48 = vmul.f32 %v1006_v57, %v252_v47  ;;  %v339_v57 = vld [vmem:[%s1285_s5 + $0x8] sm:$0xff]  ;;  %436 = vmatpush.msra.mxu3 %v765_v56 }
 0x12b   :  { %510 = vmatpush.msrb.mxu1 %v339_v57 }
 0x12c   :  { %v268_v49 = vadd.f32 %v1011_v59, %v260_v48  ;;  %v354_v59 = vld [vmem:[%s1285_s5 + $0x80] sm:$0xff]  ;;  %437 = vmatpush.msra.mxu3 %v764_v60 }
 0x12d   :  { %540 = vmatpush.msrb.mxu2 %v354_v59  ;;  %511 = vmatpush.msrb.mxu1 %v338_v61 }
 0x12e   :  { %v292_v50 = vrot.slane %v268_v49, 7  ;;  %438 = vmatpush.msra.mxu3 %v763_v62 }
 0x12f   :  { %806 = vmatpush.msra.mxu1 %v801_v33  ;;  %807 = vmatpush.msra.mxu2 %v801_v33 }
 0x130   :  { %304 = vrot.lane.b32.xlu0 %v292_v50, %s821_s13  ;;  %v293_v51 = vsel %vm287_vm6, %v291_v45, %v292_v50  ;;  %439 = vmatpush.msra.mxu3 %v762_v63 }
 0x131   :  { %302 = vrot.lane.b32.xlu2 %v293_v51, %s821_s13  ;;  %808 = vmatpush.msra.mxu1 %v800_v36 }
 0x132   :  { %440 = vmatpush.msra.mxu3 %v761_v0  ;;  %809 = vmatpush.msra.mxu2 %v800_v36 }
 0x134   :  { %441 = vmatpush.msra.mxu3 %v760_v3 }
 0x136   :  { %442 = vmatpush.msra.mxu3 %v759_v4 }
 0x138   :  { %443 = vmatpush.msra.mxu3 %v758_v5 }
 0x13a   :  { %622 = vmatpush.msrb.mxu3 %v799_v8 }
 0x13c   :  { %623 = vmatpush.msrb.mxu3 %v798_v9 }
 0x13e   :  { %624 = vmatpush.msrb.mxu3 %v797_v2 }
 0x140   :  { %625 = vmatpush.msrb.mxu3 %v796_v13 }
 0x142   :  { %626 = vmatpush.msrb.mxu3 %v795_v14 }
 0x144   :  { %627 = vmatpush.msrb.mxu3 %v794_v15 }
 0x146   :  { %628 = vmatpush.msrb.mxu3 %v793_v17 }
 0x148   :  { %629 = vmatpush.msrb.mxu3 %v792_v23 }
 0x14a   :  { %630 = vmatpush.msrb.mxu3 %v791_v28 }
 0x14c   :  { %631 = vmatpush.msrb.mxu3 %v790_v29 }
 0x14e   :  { %632 = vmatpush.msrb.mxu3 %v789_v30 }
 0x150   :  { %633 = vmatpush.msrb.mxu3 %v788_v32 }
 0x152   :  { %634 = vmatpush.msrb.mxu3 %v787_v34 }
 0x154   :  { %635 = vmatpush.msrb.mxu3 %v786_v35 }
 0x156   :  { %636 = vmatpush.msrb.mxu3 %v785_v37 }
 0x158   :  { %637 = vmatpush.msrb.mxu3 %v784_v39 }
 0x172   :  { %v295_v7 = vpop.permute.xlu2 %294 }
 0x173   :  { %313 = vst.msk [vmem:[#allocation3] sm:$0xfe] %vm312_vm10, %v295_v7 }
 0x174   :  { %315 = vst.msk [vmem:[#allocation3 + $0x8] sm:$0xfe] %vm314_vm11, %v295_v7 }
 0x17a   :  { %v330_v10 = vld [vmem:[#allocation3] sm:$0xff] }
 0x17b   :  { %512 = vmatmul.f32.vlgmr.msrb.gmra.mxu1 %v330_v10  ;;  %v331_v11 = vld [vmem:[#allocation3 + $0x8] sm:$0xff]  ;;  %v297_v12 = vpop.permute.xlu2 %296  ;;  %v356_v16 = vld [vmem:[#allocation3] sm:$0xfe] }
 0x17c   :  { %780 = vmatmul.msk.f32.vlgmr.msrb.gmra.mxu2 %vm270_vm4, %v331_v11  ;;  %317 = vst.msk [vmem:[#allocation3 + $0x10] sm:$0xff] %vm316_vm12, %v297_v12  ;;  %v357_v18 = vld [vmem:[#allocation3 + $0x8] sm:$0xfe]  ;;  %v377_v22 = vrot.slane %v356_v16, 1  ;;  %v554_v8 = vld [vmem:[#allocation3] sm:$0xfc] }
 0x17d   :  { %319 = vst.msk [vmem:[#allocation3 + $0x18] sm:$0xff] %vm318_vm13, %v297_v12  ;;  %v380_v25 = vrot.slane %v357_v18, 1  ;;  %v555_v10 = vld [vmem:[#allocation3 + $0x8] sm:$0xfc]  ;;  %v571_v13 = vrot.slane %v554_v8, 2 }
 0x17e   :  { %v574_v15 = vrot.slane %v555_v10, 2 }
 0x183   :  { %v1176_v19 = vld [vmem:[#allocation3 + $0x10] sm:$0xff] }
 0x184   :  { %v378_v20 = vrot.slane %v1176_v19, 1  ;;  %515 = vmatmul.f32.gmra.mxu1 %v1176_v19  ;;  %v1180_v21 = vld [vmem:[#allocation3 + $0x18] sm:$0xff]  ;;  %v572_v9 = vrot.slane %v1176_v19, 2 }
 0x185   :  { %v381_v24 = vrot.slane %v1180_v21, 1  ;;  %781 = vmatmul.msk.f32.gmra.mxu2 %vm270_vm4, %v1180_v21  ;;  %v575_v7 = vrot.slane %v1180_v21, 2 }
 0x186   :  { %v379_v26 = vsel %vm376_vm14, %v377_v22, %v378_v20  ;;  %v573_v16 = vsel %vm570_vm1, %v571_v13, %v572_v9 }
 0x187   :  { %444 = vmatmul.f32.vlgmr.msra.gmra.mxu3 %v379_v26  ;;  %v382_v27 = vsel %vm376_vm14, %v380_v25, %v381_v24  ;;  %v576_v18 = vsel %vm570_vm1, %v574_v15, %v575_v7 }
 0x188   :  { %776 = vmatmul.msk.f32.vlgmr.msrb.gmra.mxu0 %vm270_vm4, %v382_v27 }
 0x18b   :  { %v303_v31 = vpop.permute.xlu2 %302 }
 0x18c   :  { %326 = vst.msk [vmem:[#allocation3 + $0x40] sm:$0xff] %vm316_vm12, %v303_v31 }
 0x18d   :  { %327 = vst.msk [vmem:[#allocation3 + $0x48] sm:$0xff] %vm318_vm13, %v303_v31 }
 0x192   :  { %v299_v38 = vpop.permute.xlu0 %298 }
 0x193   :  { %321 = vst.msk [vmem:[#allocation3 + $0x20] sm:$0x1] %vm320_vm15, %v299_v38  ;;  %v1230_v47 = vld [vmem:[#allocation3 + $0x40] sm:$0xff] }
 0x194   :  { %323 = vst.msk [vmem:[#allocation3 + $0x28] sm:$0x1] %vm322_vm0, %v299_v38  ;;  %v337_v48 = vld [vmem:[#allocation3 + $0x48] sm:$0xff]  ;;  %v388_v52 = vrot.slane %v1230_v47, 1  ;;  %v582_v25 = vrot.slane %v1230_v47, 2 }
 0x195   :  { %v391_v57 = vrot.slane %v337_v48, 1  ;;  %v585_v2 = vrot.slane %v337_v48, 2 }
 0x19a   :  { %v301_v40 = vpop.permute.xlu1 %300  ;;  %v358_v41 = vld [vmem:[#allocation3 + $0x20] sm:$0x1] }
 0x19b   :  { %324 = vst.msk [vmem:[#allocation3 + $0x30] sm:$0xfe] %vm312_vm10, %v301_v40  ;;  %v383_v42 = vrot.slane %v358_v41, 1  ;;  %v359_v43 = vld [vmem:[#allocation3 + $0x28] sm:$0x1] }
 0x19c   :  { %325 = vst.msk [vmem:[#allocation3 + $0x38] sm:$0xfe] %vm314_vm11, %v301_v40  ;;  %v385_v44 = vrot.slane %v359_v43, 1  ;;  %v557_v63 = vld [vmem:[#allocation3 + $0x28] sm:$0x3] }
 0x19d   :  { %v384_v45 = vsel %vm376_vm14, %v378_v20, %v383_v42  ;;  %v579_v5 = vrot.slane %v557_v63, 2  ;;  %v556_v17 = vld [vmem:[#allocation3 + $0x20] sm:$0x3] }
 0x19e   :  { %447 = vmatmul.f32.gmra.mxu3 %v384_v45  ;;  %v386_v46 = vsel %vm376_vm14, %v381_v24, %v385_v44  ;;  %v577_v20 = vrot.slane %v556_v17, 2 }
 0x19f   :  { %777 = vmatmul.msk.f32.gmra.mxu0 %vm270_vm4, %v386_v46  ;;  %v580_v11 = vsel %vm570_vm1, %v575_v7, %v579_v5 }
 0x1a0   :  { %v578_v22 = vsel %vm570_vm1, %v572_v9, %v577_v20 }
 0x1a2   :  { %v305_v49 = vpop.permute.xlu0 %304  ;;  %v334_v50 = vld [vmem:[#allocation3 + $0x30] sm:$0xff] }
 0x1a3   :  { %v360_v51 = vld [vmem:[#allocation3 + $0x30] sm:$0xfe]  ;;  %328 = vst.msk [vmem:[#allocation3 + $0x50] sm:$0x1] %vm320_vm15, %v305_v49  ;;  %518 = vmatmul.f32.gmra.mxu1 %v334_v50  ;;  %v335_v53 = vld [vmem:[#allocation3 + $0x38] sm:$0xff] }
 0x1a4   :  { %v387_v54 = vrot.slane %v360_v51, 1  ;;  %v361_v55 = vld [vmem:[#allocation3 + $0x38] sm:$0xfe]  ;;  %329 = vst.msk [vmem:[#allocation3 + $0x58] sm:$0x1] %vm322_vm0, %v305_v49  ;;  %782 = vmatmul.msk.f32.gmra.mxu2 %vm270_vm4, %v335_v53 }
 0x1a5   :  { %v390_v56 = vrot.slane %v361_v55, 1  ;;  %v559_v14 = vld [vmem:[#allocation3 + $0x38] sm:$0xfc]  ;;  %v558_v23 = vld [vmem:[#allocation3 + $0x30] sm:$0xfc] }
 0x1a6   :  { %v389_v58 = vsel %vm376_vm14, %v387_v54, %v388_v52  ;;  %v584_v19 = vrot.slane %v559_v14, 2  ;;  %v581_v24 = vrot.slane %v558_v23, 2  ;;  %v816_v51 = vld [vmem:[%s1286_s6] ss:$0 sm:$0xff] }
 0x1a7   :  { %450 = vmatmul.f32.gmra.mxu3 %v389_v58  ;;  %v392_v59 = vsel %vm376_vm14, %v390_v56, %v391_v57 }
 0x1a8   :  { %778 = vmatmul.msk.f32.gmra.mxu0 %vm270_vm4, %v392_v59  ;;  %v586_v21 = vsel %vm570_vm1, %v584_v19, %v585_v2  ;;  %v583_v26 = vsel %vm570_vm1, %v581_v24, %v582_v25  ;;  %v818_v59 = vld [vmem:[%s1288_s8] ss:$0 sm:$0xff] }
 0x1aa   :  { %v362_v60 = vld [vmem:[#allocation3 + $0x50] sm:$0x1] }
 0x1ab   :  { %521 = vmatmul.f32.gmra.mxu1 %v1230_v47  ;;  %v393_v61 = vrot.slane %v362_v60, 1  ;;  %v363_v62 = vld [vmem:[#allocation3 + $0x58] sm:$0x1]  ;;  %v560_v27 = vld [vmem:[#allocation3 + $0x50] sm:$0x3] }
 0x1ac   :  { %783 = vmatmul.msk.f32.gmra.mxu2 %vm270_vm4, %v337_v48  ;;  %v395_v0 = vrot.slane %v363_v62, 1  ;;  %v561_v1 = vld [vmem:[#allocation3 + $0x58] sm:$0x3]  ;;  %v587_v28 = vrot.slane %v560_v27, 2 }
 0x1ad   :  { %v394_v3 = vsel %vm376_vm14, %v388_v52, %v393_v61  ;;  %v589_v6 = vrot.slane %v561_v1, 2 }
 0x1ae   :  { %v396_v4 = vsel %vm376_vm14, %v391_v57, %v395_v0  ;;  %v588_v29 = vsel %vm570_vm1, %v582_v25, %v587_v28  ;;  %v817_v57 = vld [vmem:[%s1287_s7] ss:$0 sm:$0xff] }
 0x1af   :  { %453 = vmatmul.f32.gmra.mxu3 %v394_v3  ;;  %v590_v12 = vsel %vm570_vm1, %v585_v2, %v589_v6 }
 0x1b0   :  { %779 = vmatmul.msk.f32.gmra.mxu0 %vm270_vm4, %v396_v4 }
 0x1b3   :  { %803 = vmatmul.msk.f32.vlgmr.msra.gmra.mxu1 %vm270_vm4, %v580_v11 }
 0x1b4   :  { %805 = vmatmul.msk.f32.vlgmr.msra.gmra.mxu2 %vm270_vm4, %v590_v12 }
 0x1b7   :  { %638 = vmatmul.f32.vlgmr.msrb.gmra.mxu3 %v573_v16 }
 0x1b8   :  { %802 = vmatmul.msk.f32.vlgmr.msra.gmra.mxu0 %vm270_vm4, %v576_v18 }
 0x1bb   :  { %804 = vmatmul.msk.f32.gmra.mxu1 %vm270_vm4, %v586_v21 }
 0x1bf   :  { %641 = vmatmul.f32.gmra.mxu3 %v578_v22 }
 0x1c7   :  { %644 = vmatmul.f32.gmra.mxu3 %v583_v26 }
 0x1cf   :  { %647 = vmatmul.f32.gmra.mxu3 %v588_v29 }
 0x1f8   :  { %v513_v31 = vpop.f32.mrf.mxu1 }
 0x1ff   :  { %v542_v38 = vpop.f32.mrf.mxu2 }
 0x201   :  { %v516_v35 = vpop.f32.mrf.mxu1 }
 0x205   :  { %v474_v30 = vpop.f32.mrf.mxu0 }
 0x208   :  { %v545_v43 = vpop.f32.mrf.mxu2 }
 0x20a   :  { %v445_v32 = vpop.f32.mrf.mxu3 }
 0x20b   :  { %v475_v42 = vadd.f32 %v474_v30, %v445_v32 }
 0x20d   :  { %v514_v45 = vadd.f32 %v513_v31, %v475_v42 }
 0x20f   :  { %v543_v49 = vadd.f32 %v542_v38, %v514_v45 }
 0x21c   :  { %v477_v33 = vpop.f32.mrf.mxu0 }
 0x220   :  { %v519_v39 = vpop.f32.mrf.mxu1 }
 0x221   :  { %v448_v34 = vpop.f32.mrf.mxu3 }
 0x222   :  { %v478_v48 = vadd.f32 %v477_v33, %v448_v34 }
 0x224   :  { %v517_v54 = vadd.f32 %v516_v35, %v478_v48 }
 0x225   :  { %v480_v36 = vpop.f32.mrf.mxu0 }
 0x226   :  { %v546_v63 = vadd.f32 %v545_v43, %v517_v54 }
 0x227   :  { %v548_v53 = vpop.f32.mrf.mxu2 }
 0x228   :  { %v522_v44 = vpop.f32.mrf.mxu1 }
 0x22a   :  { %v451_v37 = vpop.f32.mrf.mxu3 }
 0x22b   :  { %v481_v61 = vadd.f32 %v480_v36, %v451_v37 }
 0x22d   :  { %v483_v40 = vpop.f32.mrf.mxu0  ;;  %v520_v5 = vadd.f32 %v519_v39, %v481_v61 }
 0x22f   :  { %v551_v7 = vpop.f32.mrf.mxu2  ;;  %v549_v12 = vadd.f32 %v548_v53, %v520_v5 }
 0x230   :  { %v671_v56 = vpop.f32.mrf.mxu1 }
 0x232   :  { %v454_v41 = vpop.f32.mrf.mxu3 }
 0x233   :  { %v484_v10 = vadd.f32 %v483_v40, %v454_v41 }
 0x235   :  { %v668_v46 = vpop.f32.mrf.mxu0  ;;  %v523_v17 = vadd.f32 %v522_v44, %v484_v10 }
 0x237   :  { %v677_v20 = vpop.f32.mrf.mxu2  ;;  %v552_v23 = vadd.f32 %v551_v7, %v523_v17 }
 0x238   :  { %v674_v9 = vpop.f32.mrf.mxu1 }
 0x23a   :  { %v639_v47 = vpop.f32.mrf.mxu3 }
 0x23b   :  { %v669_v50 = vadd.f32 %v668_v46, %v639_v47 }
 0x23d   :  { %v680_v52 = vadd.f32 %v669_v50, %v543_v49 }
 0x23f   :  { %v688_v55 = vadd.f32 %v816_v51, %v680_v52 }
 0x241   :  { %vm692_vm2 = vcmp.ge.f32.partialorder %v688_v55, 0.0  ;;  %v696_v58 = vmul.f32 0.01, %v688_v55 }
 0x242   :  { %v642_v60 = vpop.f32.mrf.mxu3 }
 0x243   :  { %v700_v62 = vsel %vm692_vm2, %v688_v55, %v696_v58  ;;  %v672_v0 = vadd.f32 %v671_v56, %v642_v60 }
 0x244   :  { %v708_v1 = vmul.f32 %v817_v57, %v700_v62 }
 0x245   :  { %v681_v3 = vadd.f32 %v672_v0, %v546_v63 }
 0x246   :  { %v716_v4 = vadd.f32 %v818_v59, %v708_v1 }
 0x247   :  { %v689_v6 = vadd.f32 %v816_v51, %v681_v3 }
 0x248   :  { %720 = vst [vmem:[%s1289_s9] sm:$0xff] %v716_v4 }
 0x249   :  { %vm693_vm3 = vcmp.ge.f32.partialorder %v689_v6, 0.0  ;;  %v697_v8 = vmul.f32 0.01, %v689_v6 }
 0x24a   :  { %v645_v2 = vpop.f32.mrf.mxu3 }
 0x24b   :  { %v701_v11 = vsel %vm693_vm3, %v689_v6, %v697_v8  ;;  %v675_v13 = vadd.f32 %v674_v9, %v645_v2 }
 0x24c   :  { %v709_v14 = vmul.f32 %v817_v57, %v701_v11 }
 0x24d   :  { %v682_v15 = vadd.f32 %v675_v13, %v549_v12 }
 0x24e   :  { %v717_v16 = vadd.f32 %v818_v59, %v709_v14 }
 0x24f   :  { %v690_v18 = vadd.f32 %v816_v51, %v682_v15 }
 0x250   :  { %721 = vst [vmem:[%s1289_s9 + $0x8] sm:$0xff] %v717_v16 }
 0x251   :  { %vm694_vm4 = vcmp.ge.f32.partialorder %v690_v18, 0.0  ;;  %v698_v19 = vmul.f32 0.01, %v690_v18 }
 0x252   :  { %v648_v21 = vpop.f32.mrf.mxu3 }
 0x253   :  { %v702_v22 = vsel %vm694_vm4, %v690_v18, %v698_v19  ;;  %v678_v24 = vadd.f32 %v677_v20, %v648_v21 }
 0x254   :  { %v710_v25 = vmul.f32 %v817_v57, %v702_v22 }
 0x255   :  { %v683_v26 = vadd.f32 %v678_v24, %v552_v23 }
 0x256   :  { %v718_v27 = vadd.f32 %v818_v59, %v710_v25 }
 0x257   :  { %v691_v28 = vadd.f32 %v816_v51, %v683_v26 }
 0x258   :  { %722 = vst [vmem:[%s1289_s9 + $0x10] sm:$0xff] %v718_v27 }
 0x259   :  { %vm695_vm5 = vcmp.ge.f32.partialorder %v691_v28, 0.0  ;;  %v699_v29 = vmul.f32 0.01, %v691_v28 }
 0x25b   :  { %v703_v30 = vsel %vm695_vm5, %v691_v28, %v699_v29 }
 0x25c   :  { %v711_v31 = vmul.f32 %v817_v57, %v703_v30 }
 0x25e   :  { %v719_v32 = vadd.f32 %v818_v59, %v711_v31 }
 0x260   :  { %723 = vst [vmem:[%s1289_s9 + $0x18] sm:$0xff] %v719_v32 }

</bundles_post_ra>
